<compile_context>
chip_gen: v7x
topology: tpu7x:2x2x1
jax: 0.10.0
libtpu: 0.0.40
codegen_flags: <defaults>
</compile_context>

<pallas_src>
import functools
import math

import jax
import jax.numpy as jnp
import numpy as np
from jax.experimental import pallas as pl
from jax.experimental.pallas import tpu as pltpu


# ----------------------------- shared in-kernel compute ----------------------


def _fused_pe_ln_mask(emb, ids_col, pe_ref, gamma_ref, beta_ref, alpha_ref,
                      out_ref, d_real, eps, padding_idx):
    """alpha*pe add + LayerNorm(d_model) + padding mask, written to out_ref[0].

    emb:     (TILE_S, D_pad) f32, padded lanes (>= d_real) are exactly zero.
    ids_col: (TILE_S, 1) int32.
    """
    d_pad = emb.shape[-1]
    x = emb + alpha_ref[0] * pe_ref[...]

    # Padded lanes of emb and pe are zero, so sum / d_real is the correct mean
    # over the real d_model.
    mean = jnp.sum(x, axis=-1, keepdims=True) * (1.0 / d_real)
    centered = x - mean
    if d_pad != d_real:
        lane = jax.lax.broadcasted_iota(jnp.int32, (1, d_pad), 1)
        centered = jnp.where(lane < d_real, centered, 0.0)
    var = jnp.sum(centered * centered, axis=-1, keepdims=True) * (1.0 / d_real)

    # Fold the padding mask into the cheap per-row scale; beta masked once.
    pad_mask = (ids_col != padding_idx).astype(jnp.float32)        # (TILE_S, 1)
    inv = jax.lax.rsqrt(var + eps) * pad_mask
    out_ref[0] = (centered * inv * gamma_ref[...]
                  + beta_ref[...] * pad_mask).astype(out_ref.dtype)


# ----------------------------- kernels ---------------------------------------


def _encoder_kernel_onehot(padding_idx, eps, d_real,
                           ids_col_ref, mu_hi_ref, mu_lo_ref, pe_ref,
                           gamma_ref, beta_ref, alpha_ref, out_ref):
    """Small-vocab path: embedding gather as (one-hot @ mu) on the MXU.

    mu is pre-split into bf16 hi/lo parts, so both matmuls run at the native
    bf16 MXU rate while the reconstructed row mu_hi[id] + mu_lo[id] stays
    accurate to ~2^-17 relative.
    """
    ids_col = ids_col_ref[0]                                       # (TILE_S, 1)
    tile_s = ids_col.shape[0]
    v_pad = mu_hi_ref.shape[0]
    onehot = (ids_col == jax.lax.broadcasted_iota(jnp.int32, (tile_s, v_pad), 1)
              ).astype(jnp.bfloat16)                               # (TILE_S, V_pad)
    emb = jnp.dot(onehot, mu_hi_ref[...], preferred_element_type=jnp.float32)
    emb = emb + jnp.dot(onehot, mu_lo_ref[...], preferred_element_type=jnp.float32)
    _fused_pe_ln_mask(emb, ids_col, pe_ref, gamma_ref, beta_ref, alpha_ref,
                      out_ref, d_real, eps, padding_idx)


def _encoder_kernel_gather(padding_idx, eps, d_real, s_pad, tile_s,
                           ids_flat_sm,                            # SMEM prefetch
                           ids_col_ref, mu_hbm, pe_ref,
                           gamma_ref, beta_ref, alpha_ref,
                           out_ref, emb_buf, gather_sem):
    """Large-vocab path: true per-row DMA gather of mu from HBM."""
    s = pl.program_id(0)
    b = pl.program_id(1)
    base = b * s_pad + s * tile_s

    def _issue(t, carry):
        row = ids_flat_sm[base + t]
        pltpu.make_async_copy(mu_hbm.at[pl.ds(row, 1), :],
                              emb_buf.at[pl.ds(t, 1), :],
                              gather_sem.at[0]).start()
        return carry

    def _drain(t, carry):
        # All row copies are the same size, so any same-shaped descriptor can
        # be used to wait on the shared semaphore.
        pltpu.make_async_copy(mu_hbm.at[pl.ds(0, 1), :],
                              emb_buf.at[pl.ds(t, 1), :],
                              gather_sem.at[0]).wait()
        return carry

    jax.lax.fori_loop(0, tile_s, _issue, 0)
    jax.lax.fori_loop(0, tile_s, _drain, 0)

    _fused_pe_ln_mask(emb_buf[...], ids_col_ref[0], pe_ref, gamma_ref,
                      beta_ref, alpha_ref, out_ref, d_real, eps, padding_idx)


# ----------------------------- helpers ---------------------------------------


def _round_up(x, m):
    return ((x + m - 1) // m) * m


def _device_kind():
    try:
        return jax.devices()[0].device_kind.lower()
    except Exception:
        return ""


def _is_two_core_chip():
    # v7x has 2 TensorCores per chip; v5e/v6e have 1.
    return "7" in _device_kind()


def _dimension_semantics(s_tiles):
    # On v7x, split the seq-tile axis across the two TensorCores when it has an
    # even extent >= 2; otherwise plain parallel (no-op on single-TC chips).
    if _is_two_core_chip() and s_tiles >= 2 and s_tiles % 2 == 0:
        return (pltpu.CORE_PARALLEL, pltpu.PARALLEL)
    return (pltpu.PARALLEL, pltpu.PARALLEL)


def _vmem_limit_bytes(need_bytes):
    # Leave headroom below physical VMEM: 64 MiB/TC on v7x, 128 MiB on v5e/v6e.
    cap = (56 << 20) if _is_two_core_chip() else (100 << 20)
    return int(min(max(int(need_bytes * 1.25) + (4 << 20), 16 << 20), cap))


def _block_spec(block_shape, index_map, single_buffer=False):
    if single_buffer:
        # Grid-invariant input (constant index_map): one buffer is enough,
        # halving its resident VMEM footprint.
        return pl.BlockSpec(block_shape, index_map, pipeline_mode=pl.Buffered(1))
    return pl.BlockSpec(block_shape, index_map)


def make_positional_encoding(d_model, max_len=5000):
    """Matches the PositionalEncoding buffer `pe` exactly (float32)."""
    position = np.arange(max_len, dtype=np.float32)[:, None]
    div_term = np.exp(np.arange(0, d_model, 2, dtype=np.float32)
                      * (-math.log(10000.0) / d_model))
    pe = np.zeros((max_len, d_model), dtype=np.float32)
    pe[:, 0::2] = np.sin(position * div_term)
    pe[:, 1::2] = np.cos(position * div_term)
    return jnp.asarray(pe)                                         # (max_len, D)


# ----------------------------- wrapper ---------------------------------------


def probabilistic_phonetic_encoder(phoneme_ids, params, padding_idx=0, eps=1e-5,
                                   tile_s=512, out_dtype=jnp.float32,
                                   use_dma_gather=None,
                                   gather_vocab_threshold=2048):
    """phoneme_ids: [B, S] int -> [B, S, d_model] (eval-mode forward).

    tile_s: sequence rows per grid step (sweep 256/512/1024 per generation;
            bias smaller on v7x's 64 MiB VMEM).
    """
    B, S = phoneme_ids.shape
    mu = params["phoneme_mu"].astype(jnp.float32)
    V, D = mu.shape
    D_pad = _round_up(D, 128)                     # lane-dense compute / stores

    S8 = _round_up(S, 8)
    TILE_S = _round_up(min(tile_s, S8), 8)
    S_TILES = pl.cdiv(S8, TILE_S)
    S_pad = S_TILES * TILE_S

    ids = phoneme_ids.astype(jnp.int32)
    if S_pad > S:
        ids = jnp.pad(ids, ((0, 0), (0, S_pad - S)), constant_values=padding_idx)
    # (TILE_S, 1) id column per tile for the padding mask.  The last-dim-1
    # block is lane-padded in VMEM, but its payload is only ~TILE_S*4 B per
    # tile; gather addressing uses the SMEM scalar-prefetch copy instead.
    ids_col = ids[..., None]                                       # (B, S_pad, 1)

    pe = params["pe"][:S].astype(jnp.float32)
    pe = jnp.pad(pe, ((0, S_pad - pe.shape[0]), (0, D_pad - D)))   # (S_pad, D_pad)

    gamma = jnp.pad(params["ln_gamma"].reshape(1, D).astype(jnp.float32),
                    ((0, 0), (0, D_pad - D)))
    beta = jnp.pad(params["ln_beta"].reshape(1, D).astype(jnp.float32),
                   ((0, 0), (0, D_pad - D)))
    alpha = params["alpha"].reshape(1).astype(jnp.float32)
    mu_pad = jnp.pad(mu, ((0, 0), (0, D_pad - D)))                 # (V, D_pad)

    if use_dma_gather is None:
        # Matmul gather scales as TILE_S*V; switch to the DMA row gather once
        # the vocab is large (or a VMEM-resident mu would hog VMEM).
        use_dma_gather = (V > gather_vocab_threshold
                          or V * D_pad * 4 > (16 << 20))

    out_bytes = jnp.dtype(out_dtype).itemsize
    dim_sems = _dimension_semantics(S_TILES)
    out_shape = jax.ShapeDtypeStruct((B, S_pad, D_pad), out_dtype)

    def _run(single_buffer_residents):
        if use_dma_gather:
            ids_flat = ids.reshape(B * S_pad)
            # TODO(synk): for very long B*S replace the flat id prefetch
            # (4*B*S bytes of SMEM) with a per-tile DMA into SMEM scratch.
            out_block = pl.BlockSpec((1, TILE_S, D_pad),
                                     lambda s, b, ids_sm: (b, s, 0))
            in_specs = [
                pl.BlockSpec((1, TILE_S, 1), lambda s, b, ids_sm: (b, s, 0)),
                pl.BlockSpec(memory_space=pl.ANY),                 # mu in HBM
                pl.BlockSpec((TILE_S, D_pad), lambda s, b, ids_sm: (s, 0)),
                _block_spec((1, D_pad), lambda s, b, ids_sm: (0, 0),
                            single_buffer_residents),
                _block_spec((1, D_pad), lambda s, b, ids_sm: (0, 0),
                            single_buffer_residents),
                pl.BlockSpec(memory_space=pltpu.MemorySpace.SMEM),  # alpha
            ]
            grid_spec = pltpu.PrefetchScalarGridSpec(
                num_scalar_prefetch=1,
                grid=(S_TILES, B),
                in_specs=in_specs,
                out_specs=out_block,
                scratch_shapes=[pltpu.VMEM((TILE_S, D_pad), jnp.float32),
                                pltpu.SemaphoreType.DMA((1,))],
            )
            kernel = functools.partial(_encoder_kernel_gather, padding_idx,
                                       eps, D, S_pad, TILE_S)
            args = (ids_flat, ids_col, mu_pad, pe, gamma, beta, alpha)
            vmem_need = (
                2 * TILE_S * D_pad * 4            # pe tiles
                + 2 * TILE_S * D_pad * out_bytes  # out tiles
                + 2 * TILE_S * 128 * 4            # ids_col tiles (lane-padded)
                + TILE_S * D_pad * 4              # gathered-row scratch
                + 2 * 8 * D_pad * 4               # gamma / beta
                + 4 * TILE_S * D_pad * 4          # compute temporaries
            )
        else:
            V_pad = _round_up(V, 256)             # MXU-friendly contraction dim
            mu_v = jnp.pad(mu_pad, ((0, V_pad - V), (0, 0)))
            mu_hi = mu_v.astype(jnp.bfloat16)
            mu_lo = (mu_v - mu_hi.astype(jnp.float32)).astype(jnp.bfloat16)
            out_block = pl.BlockSpec((1, TILE_S, D_pad), lambda s, b: (b, s, 0))
            in_specs = [
                pl.BlockSpec((1, TILE_S, 1), lambda s, b: (b, s, 0)),
                _block_spec((V_pad, D_pad), lambda s, b: (0, 0),
                            single_buffer_residents),
                _block_spec((V_pad, D_pad), lambda s, b: (0, 0),
                            single_buffer_residents),
                pl.BlockSpec((TILE_S, D_pad), lambda s, b: (s, 0)),
                _block_spec((1, D_pad), lambda s, b: (0, 0),
                            single_buffer_residents),
                _block_spec((1, D_pad), lambda s, b: (0, 0),
                            single_buffer_residents),
                pl.BlockSpec(memory_space=pltpu.MemorySpace.SMEM),  # alpha
            ]
            grid_spec = pltpu.PrefetchScalarGridSpec(
                num_scalar_prefetch=0,
                grid=(S_TILES, B),
                in_specs=in_specs,
                out_specs=out_block,
            )
            kernel = functools.partial(_encoder_kernel_onehot, padding_idx,
                                       eps, D)
            args = (ids_col, mu_hi, mu_lo, pe, gamma, beta, alpha)
            n_mu_buf = 1 if single_buffer_residents else 2
            vmem_need = (
                2 * TILE_S * D_pad * 4
                + 2 * TILE_S * D_pad * out_bytes
                + 2 * TILE_S * 128 * 4
                + n_mu_buf * 2 * V_pad * D_pad * 2   # mu hi/lo (bf16)
                + TILE_S * V_pad * 2                 # one-hot temporary
                + 4 * TILE_S * D_pad * 4
            )

        return pl.pallas_call(
            kernel,
            out_shape=out_shape,
            grid_spec=grid_spec,
            compiler_params=pltpu.CompilerParams(
                dimension_semantics=dim_sems,
                vmem_limit_bytes=_vmem_limit_bytes(vmem_need),
            ),
        )(*args)

    try:
        out = _run(single_buffer_residents=True)
    except Exception:
        # Fallback if this jax/libtpu rejects pl.Buffered(1) single-buffering
        # of grid-invariant inputs.
        out = _run(single_buffer_residents=False)

    return out[:, :S, :D]


# ----------------------------- params / reference ----------------------------


def init_params(key, num_phonemes, d_model):
    """Deterministic parameter init matching the module's __init__/_init_parameters."""
    (k_mu,) = jax.random.split(key, 1)
    std = math.sqrt(2.0 / (num_phonemes + d_model))   # xavier_normal_
    phoneme_mu = jax.random.normal(k_mu, (num_phonemes, d_model), jnp.float32) * std
    return {
        "phoneme_mu": phoneme_mu,
        "phoneme_logvar": jnp.full((num_phonemes, d_model), -5.0, jnp.float32),  # unused in eval
        "alpha": jnp.ones((1,), jnp.float32),
        "ln_gamma": jnp.ones((d_model,), jnp.float32),
        "ln_beta": jnp.zeros((d_model,), jnp.float32),
        "pe": make_positional_encoding(d_model),
    }


def reference_forward(phoneme_ids, params, padding_idx=0, eps=1e-5):
    """Pure-JAX reference of the eval-mode PyTorch forward."""
    mu = params["phoneme_mu"][phoneme_ids]                           # (B, S, D)
    S = phoneme_ids.shape[1]
    emb = mu + params["alpha"][0] * params["pe"][:S][None, :, :]
    mean = jnp.mean(emb, axis=-1, keepdims=True)
    var = jnp.mean((emb - mean) ** 2, axis=-1, keepdims=True)
    normed = (emb - mean) / jnp.sqrt(var + eps)
    normed = normed * params["ln_gamma"] + params["ln_beta"]
    mask = (phoneme_ids != padding_idx)[..., None].astype(jnp.float32)
    return normed * mask


# ----------------------------- demo ------------------------------------------


if __name__ == "__main__":
    key = jax.random.PRNGKey(0)
    k1, k2, k3, k4, k5 = jax.random.split(key, 5)

    # ---- case 1: small vocab -> one-hot (bf16 hi/lo split) MXU gather path ----
    B, S, V, D = 2, 8, 16, 32
    params = init_params(k1, V, D)
    # Perturb the LN affine and alpha so those code paths are actually tested.
    params["ln_gamma"] = 1.0 + 0.1 * jax.random.normal(k2, (D,), jnp.float32)
    params["ln_beta"] = 0.05 * jax.random.normal(k3, (D,), jnp.float32)
    params["alpha"] = jnp.asarray([0.8], jnp.float32)
    phoneme_ids = jax.random.randint(k4, (B, S), 0, V, dtype=jnp.int32)

    out = jax.block_until_ready(probabilistic_phonetic_encoder(phoneme_ids, params))
    ref = reference_forward(phoneme_ids, params)
    assert out.shape == (B, S, D)
    np.testing.assert_allclose(np.asarray(out), np.asarray(ref),
                               atol=2e-4, rtol=2e-4)

    # ---- case 2: force the scalar-prefetch DMA row-gather path, with several
    #      sequence tiles and a padded tail ----
    B2, S2, V2, D2 = 2, 40, 64, 32
    params2 = init_params(k5, V2, D2)
    params2["alpha"] = jnp.asarray([1.3], jnp.float32)
    phoneme_ids2 = jax.random.randint(k2, (B2, S2), 0, V2, dtype=jnp.int32)

    out2 = jax.block_until_ready(
        probabilistic_phonetic_encoder(phoneme_ids2, params2,
                                       tile_s=16, use_dma_gather=True))
    ref2 = reference_forward(phoneme_ids2, params2)
    assert out2.shape == (B2, S2, D2)
    np.testing.assert_allclose(np.asarray(out2), np.asarray(ref2),
                               atol=2e-4, rtol=2e-4)

    print("KERNEL_OK")
</pallas_src>

<mosaic_0001>
module attributes {stable_mosaic.version = 11 : i64} {
  func.func @_encoder_kernel_onehot(%arg0: i32, %arg1: i32, %arg2: memref<1x8x1xi32, #tpu.memory_space<vmem>>, %arg3: memref<256x128xbf16, #tpu.memory_space<vmem>>, %arg4: memref<256x128xbf16, #tpu.memory_space<vmem>>, %arg5: memref<8x128xf32, #tpu.memory_space<vmem>>, %arg6: memref<1x128xf32, #tpu.memory_space<vmem>>, %arg7: memref<1x128xf32, #tpu.memory_space<vmem>>, %arg8: memref<1xf32, #tpu.memory_space<smem>>, %arg9: memref<1x8x128xf32, #tpu.memory_space<vmem>>) attributes {dimension_semantics = [#tpu.dimension_semantics<parallel>, #tpu.dimension_semantics<parallel>], iteration_bounds = array<i64: 1, 2>, scalar_prefetch = 0 : i64, scratch_operands = 0 : i64, tpu.core_type = #tpu.core_type<tc>, window_params = [{transform_indices = @transform_0, window_bounds = array<i64: 1, 8, 1>}, {pipeline_mode = #tpu.pipeline_mode<synchronous>, transform_indices = @transform_1, window_bounds = array<i64: 256, 128>}, {pipeline_mode = #tpu.pipeline_mode<synchronous>, transform_indices = @transform_2, window_bounds = array<i64: 256, 128>}, {transform_indices = @transform_3, window_bounds = array<i64: 8, 128>}, {pipeline_mode = #tpu.pipeline_mode<synchronous>, transform_indices = @transform_4, window_bounds = array<i64: 1, 128>}, {pipeline_mode = #tpu.pipeline_mode<synchronous>, transform_indices = @transform_5, window_bounds = array<i64: 1, 128>}, {transform_indices = @transform_6, window_bounds = array<i64: 1>}, {transform_indices = @transform_7, window_bounds = array<i64: 1, 8, 128>}]} {
    %c0 = arith.constant 0 : index
    %c0_0 = arith.constant 0 : index
    %c0_1 = arith.constant 0 : index
    %0 = vector.load %arg2[%c0, %c0_0, %c0_1] : memref<1x8x1xi32, #tpu.memory_space<vmem>>, vector<1x8x1xi32>
    %1 = vector.shape_cast %0 : vector<1x8x1xi32> to vector<8x1xi32>
    %2 = tpu.iota {dimensions = array<i32: 1>} : vector<8x256xi32>
    %3 = vector.broadcast %1 : vector<8x1xi32> to vector<8x256xi32>
    %4 = arith.cmpi eq, %3, %2 : vector<8x256xi32>
    %5 = arith.extui %4 : vector<8x256xi1> to vector<8x256xi32>
    %6 = arith.sitofp %5 : vector<8x256xi32> to vector<8x256xf32>
    %7 = arith.truncf %6 : vector<8x256xf32> to vector<8x256xbf16>
    %c0_2 = arith.constant 0 : index
    %c0_3 = arith.constant 0 : index
    %8 = vector.load %arg3[%c0_2, %c0_3] : memref<256x128xbf16, #tpu.memory_space<vmem>>, vector<256x128xbf16>
    %cst = arith.constant dense<0.000000e+00> : vector<8x128xf32>
    %9 = tpu.matmul %7, %8, %cst {dimension_numbers = #tpu.dot_dimension_numbers<[1], [0], [0], [1], [0, 0, 1, 1], [], []>} : vector<8x256xbf16>, vector<256x128xbf16>, vector<8x128xf32> -> vector<8x128xf32>
    %c0_4 = arith.constant 0 : index
    %c0_5 = arith.constant 0 : index
    %10 = vector.load %arg4[%c0_4, %c0_5] : memref<256x128xbf16, #tpu.memory_space<vmem>>, vector<256x128xbf16>
    %cst_6 = arith.constant dense<0.000000e+00> : vector<8x128xf32>
    %11 = tpu.matmul %7, %10, %cst_6 {dimension_numbers = #tpu.dot_dimension_numbers<[1], [0], [0], [1], [0, 0, 1, 1], [], []>} : vector<8x256xbf16>, vector<256x128xbf16>, vector<8x128xf32> -> vector<8x128xf32>
    %12 = arith.addf %9, %11 : vector<8x128xf32>
    %c0_7 = arith.constant 0 : index
    %13 = memref.load %arg8[%c0_7] : memref<1xf32, #tpu.memory_space<smem>>
    %c0_8 = arith.constant 0 : index
    %c0_9 = arith.constant 0 : index
    %14 = vector.load %arg5[%c0_8, %c0_9] : memref<8x128xf32, #tpu.memory_space<vmem>>, vector<8x128xf32>
    %15 = vector.broadcast %13 : f32 to vector<8x128xf32>
    %16 = arith.mulf %15, %14 : vector<8x128xf32>
    %17 = arith.addf %12, %16 : vector<8x128xf32>
    %cst_10 = arith.constant dense<0.000000e+00> : vector<8xf32>
    %18 = vector.multi_reduction <add>, %17, %cst_10 [1] : vector<8x128xf32> to vector<8xf32>
    %19 = vector.shape_cast %18 : vector<8xf32> to vector<8x1xf32>
    %cst_11 = arith.constant 3.125000e-02 : f32
    %20 = vector.broadcast %cst_11 : f32 to vector<8x1xf32>
    %21 = arith.mulf %19, %20 : vector<8x1xf32>
    %22 = vector.broadcast %21 : vector<8x1xf32> to vector<8x128xf32>
    %23 = arith.subf %17, %22 : vector<8x128xf32>
    %24 = tpu.iota {dimensions = array<i32: 1>} : vector<1x128xi32>
    %c32_i32 = arith.constant 32 : i32
    %25 = vector.broadcast %c32_i32 : i32 to vector<1x128xi32>
    %26 = arith.cmpi slt, %24, %25 : vector<1x128xi32>
    %cst_12 = arith.constant 0.000000e+00 : f32
    %27 = vector.shape_cast %26 : vector<1x128xi1> to vector<1x128xi1>
    %28 = vector.broadcast %27 : vector<1x128xi1> to vector<8x128xi1>
    %29 = vector.broadcast %cst_12 : f32 to vector<8x128xf32>
    %30 = arith.select %28, %23, %29 : vector<8x128xi1>, vector<8x128xf32>
    %31 = arith.mulf %30, %30 : vector<8x128xf32>
    %cst_13 = arith.constant dense<0.000000e+00> : vector<8xf32>
    %32 = vector.multi_reduction <add>, %31, %cst_13 [1] : vector<8x128xf32> to vector<8xf32>
    %33 = vector.shape_cast %32 : vector<8xf32> to vector<8x1xf32>
    %cst_14 = arith.constant 3.125000e-02 : f32
    %34 = vector.broadcast %cst_14 : f32 to vector<8x1xf32>
    %35 = arith.mulf %33, %34 : vector<8x1xf32>
    %c0_i32 = arith.constant 0 : i32
    %36 = vector.broadcast %c0_i32 : i32 to vector<8x1xi32>
    %37 = arith.cmpi ne, %1, %36 : vector<8x1xi32>
    %38 = arith.extui %37 : vector<8x1xi1> to vector<8x1xi32>
    %39 = arith.sitofp %38 : vector<8x1xi32> to vector<8x1xf32>
    %cst_15 = arith.constant 9.99999974E-6 : f32
    %40 = vector.broadcast %cst_15 : f32 to vector<8x1xf32>
    %41 = arith.addf %35, %40 : vector<8x1xf32>
    %42 = math.rsqrt %41 : vector<8x1xf32>
    %43 = arith.mulf %42, %39 : vector<8x1xf32>
    %44 = vector.broadcast %43 : vector<8x1xf32> to vector<8x128xf32>
    %45 = arith.mulf %30, %44 : vector<8x128xf32>
    %c0_16 = arith.constant 0 : index
    %c0_17 = arith.constant 0 : index
    %46 = vector.load %arg6[%c0_16, %c0_17] : memref<1x128xf32, #tpu.memory_space<vmem>>, vector<1x128xf32>
    %47 = vector.broadcast %46 : vector<1x128xf32> to vector<8x128xf32>
    %48 = arith.mulf %45, %47 : vector<8x128xf32>
    %c0_18 = arith.constant 0 : index
    %c0_19 = arith.constant 0 : index
    %49 = vector.load %arg7[%c0_18, %c0_19] : memref<1x128xf32, #tpu.memory_space<vmem>>, vector<1x128xf32>
    %50 = vector.broadcast %49 : vector<1x128xf32> to vector<8x128xf32>
    %51 = vector.broadcast %39 : vector<8x1xf32> to vector<8x128xf32>
    %52 = arith.mulf %50, %51 : vector<8x128xf32>
    %53 = arith.addf %48, %52 : vector<8x128xf32>
    %c0_20 = arith.constant 0 : index
    %c0_21 = arith.constant 0 : index
    %c0_22 = arith.constant 0 : index
    %54 = vector.load %arg9[%c0_20, %c0_21, %c0_22] : memref<1x8x128xf32, #tpu.memory_space<vmem>>, vector<1x8x128xf32>
    %55 = vector.shape_cast %54 : vector<1x8x128xf32> to vector<8x128xf32>
    %56 = vector.shape_cast %53 : vector<8x128xf32> to vector<1x8x128xf32>
    tpu.vector_store %arg9[%c0_20, %c0_21, %c0_22], %56 {strides = array<i32>} : memref<1x8x128xf32, #tpu.memory_space<vmem>>, vector<1x8x128xf32>,
    return
  }
  func.func @transform_0(%arg0: i32, %arg1: i32) -> (i32, i32, i32) {
    %c0_i32 = arith.constant 0 : i32
    %c0_i32_0 = arith.constant 0 : i32
    return %arg1, %arg0, %c0_i32 : i32, i32, i32
  }
  func.func @transform_1(%arg0: i32, %arg1: i32) -> (i32, i32) {
    %c0_i32 = arith.constant 0 : i32
    %c0_i32_0 = arith.constant 0 : i32
    %c0_i32_1 = arith.constant 0 : i32
    return %c0_i32, %c0_i32_0 : i32, i32
  }
  func.func @transform_2(%arg0: i32, %arg1: i32) -> (i32, i32) {
    %c0_i32 = arith.constant 0 : i32
    %c0_i32_0 = arith.constant 0 : i32
    %c0_i32_1 = arith.constant 0 : i32
    return %c0_i32, %c0_i32_0 : i32, i32
  }
  func.func @transform_3(%arg0: i32, %arg1: i32) -> (i32, i32) {
    %c0_i32 = arith.constant 0 : i32
    %c0_i32_0 = arith.constant 0 : i32
    return %arg0, %c0_i32 : i32, i32
  }
  func.func @transform_4(%arg0: i32, %arg1: i32) -> (i32, i32) {
    %c0_i32 = arith.constant 0 : i32
    %c0_i32_0 = arith.constant 0 : i32
    %c0_i32_1 = arith.constant 0 : i32
    return %c0_i32, %c0_i32_0 : i32, i32
  }
  func.func @transform_5(%arg0: i32, %arg1: i32) -> (i32, i32) {
    %c0_i32 = arith.constant 0 : i32
    %c0_i32_0 = arith.constant 0 : i32
    %c0_i32_1 = arith.constant 0 : i32
    return %c0_i32, %c0_i32_0 : i32, i32
  }
  func.func @transform_6(%arg0: i32, %arg1: i32) -> i32 {
    %c0_i32 = arith.constant 0 : i32
    %c0_i32_0 = arith.constant 0 : i32
    return %c0_i32 : i32
  }
  func.func @transform_7(%arg0: i32, %arg1: i32) -> (i32, i32, i32) {
    %c0_i32 = arith.constant 0 : i32
    %c0_i32_0 = arith.constant 0 : i32
    return %arg1, %arg0, %c0_i32 : i32, i32, i32
  }
}

module attributes {stable_mosaic.version = 11 : i64} {
  func.func @_encoder_kernel_onehot(%arg0: i32, %arg1: i32, %arg2: memref<1x8x1xi32, #tpu.memory_space<vmem>>, %arg3: memref<256x128xbf16, #tpu.memory_space<vmem>>, %arg4: memref<256x128xbf16, #tpu.memory_space<vmem>>, %arg5: memref<8x128xf32, #tpu.memory_space<vmem>>, %arg6: memref<1x128xf32, #tpu.memory_space<vmem>>, %arg7: memref<1x128xf32, #tpu.memory_space<vmem>>, %arg8: memref<1xf32, #tpu.memory_space<smem>>, %arg9: memref<1x8x128xf32, #tpu.memory_space<vmem>>) attributes {dimension_semantics = [#tpu.dimension_semantics<parallel>, #tpu.dimension_semantics<parallel>], iteration_bounds = array<i64: 1, 2>, scalar_prefetch = 0 : i64, scratch_operands = 0 : i64, tpu.core_type = #tpu.core_type<tc>, window_params = [{transform_indices = @transform_0, window_bounds = array<i64: 1, 8, 1>}, {pipeline_mode = #tpu.pipeline_mode<synchronous>, transform_indices = @transform_1, window_bounds = array<i64: 256, 128>}, {pipeline_mode = #tpu.pipeline_mode<synchronous>, transform_indices = @transform_2, window_bounds = array<i64: 256, 128>}, {transform_indices = @transform_3, window_bounds = array<i64: 8, 128>}, {pipeline_mode = #tpu.pipeline_mode<synchronous>, transform_indices = @transform_4, window_bounds = array<i64: 1, 128>}, {pipeline_mode = #tpu.pipeline_mode<synchronous>, transform_indices = @transform_5, window_bounds = array<i64: 1, 128>}, {transform_indices = @transform_6, window_bounds = array<i64: 1>}, {transform_indices = @transform_7, window_bounds = array<i64: 1, 8, 128>}]} {
    %c0 = arith.constant 0 : index
    %c0_0 = arith.constant 0 : index
    %c0_1 = arith.constant 0 : index
    %0 = vector.load %arg2[%c0, %c0_0, %c0_1] : memref<1x8x1xi32, #tpu.memory_space<vmem>>, vector<1x8x1xi32>
    %1 = vector.shape_cast %0 : vector<1x8x1xi32> to vector<8x1xi32>
    %2 = tpu.iota {dimensions = array<i32: 1>} : vector<8x256xi32>
    %3 = vector.broadcast %1 : vector<8x1xi32> to vector<8x256xi32>
    %4 = arith.cmpi eq, %3, %2 : vector<8x256xi32>
    %5 = arith.extui %4 : vector<8x256xi1> to vector<8x256xi32>
    %6 = arith.sitofp %5 : vector<8x256xi32> to vector<8x256xf32>
    %7 = arith.truncf %6 : vector<8x256xf32> to vector<8x256xbf16>
    %c0_2 = arith.constant 0 : index
    %c0_3 = arith.constant 0 : index
    %8 = vector.load %arg3[%c0_2, %c0_3] : memref<256x128xbf16, #tpu.memory_space<vmem>>, vector<256x128xbf16>
    %cst = arith.constant dense<0.000000e+00> : vector<8x128xf32>
    %9 = tpu.matmul %7, %8, %cst {dimension_numbers = #tpu.dot_dimension_numbers<[1], [0], [0], [1], [0, 0, 1, 1], [], []>} : vector<8x256xbf16>, vector<256x128xbf16>, vector<8x128xf32> -> vector<8x128xf32>
    %c0_4 = arith.constant 0 : index
    %c0_5 = arith.constant 0 : index
    %10 = vector.load %arg4[%c0_4, %c0_5] : memref<256x128xbf16, #tpu.memory_space<vmem>>, vector<256x128xbf16>
    %cst_6 = arith.constant dense<0.000000e+00> : vector<8x128xf32>
    %11 = tpu.matmul %7, %10, %cst_6 {dimension_numbers = #tpu.dot_dimension_numbers<[1], [0], [0], [1], [0, 0, 1, 1], [], []>} : vector<8x256xbf16>, vector<256x128xbf16>, vector<8x128xf32> -> vector<8x128xf32>
    %12 = arith.addf %9, %11 : vector<8x128xf32>
    %c0_7 = arith.constant 0 : index
    %13 = memref.load %arg8[%c0_7] : memref<1xf32, #tpu.memory_space<smem>>
    %c0_8 = arith.constant 0 : index
    %c0_9 = arith.constant 0 : index
    %14 = vector.load %arg5[%c0_8, %c0_9] : memref<8x128xf32, #tpu.memory_space<vmem>>, vector<8x128xf32>
    %15 = vector.broadcast %13 : f32 to vector<8x128xf32>
    %16 = arith.mulf %15, %14 : vector<8x128xf32>
    %17 = arith.addf %12, %16 : vector<8x128xf32>
    %cst_10 = arith.constant dense<0.000000e+00> : vector<8xf32>
    %18 = vector.multi_reduction <add>, %17, %cst_10 [1] : vector<8x128xf32> to vector<8xf32>
    %19 = vector.shape_cast %18 : vector<8xf32> to vector<8x1xf32>
    %cst_11 = arith.constant 3.125000e-02 : f32
    %20 = vector.broadcast %cst_11 : f32 to vector<8x1xf32>
    %21 = arith.mulf %19, %20 : vector<8x1xf32>
    %22 = vector.broadcast %21 : vector<8x1xf32> to vector<8x128xf32>
    %23 = arith.subf %17, %22 : vector<8x128xf32>
    %24 = tpu.iota {dimensions = array<i32: 1>} : vector<1x128xi32>
    %c32_i32 = arith.constant 32 : i32
    %25 = vector.broadcast %c32_i32 : i32 to vector<1x128xi32>
    %26 = arith.cmpi slt, %24, %25 : vector<1x128xi32>
    %cst_12 = arith.constant 0.000000e+00 : f32
    %27 = vector.shape_cast %26 : vector<1x128xi1> to vector<1x128xi1>
    %28 = vector.broadcast %27 : vector<1x128xi1> to vector<8x128xi1>
    %29 = vector.broadcast %cst_12 : f32 to vector<8x128xf32>
    %30 = arith.select %28, %23, %29 : vector<8x128xi1>, vector<8x128xf32>
    %31 = arith.mulf %30, %30 : vector<8x128xf32>
    %cst_13 = arith.constant dense<0.000000e+00> : vector<8xf32>
    %32 = vector.multi_reduction <add>, %31, %cst_13 [1] : vector<8x128xf32> to vector<8xf32>
    %33 = vector.shape_cast %32 : vector<8xf32> to vector<8x1xf32>
    %cst_14 = arith.constant 3.125000e-02 : f32
    %34 = vector.broadcast %cst_14 : f32 to vector<8x1xf32>
    %35 = arith.mulf %33, %34 : vector<8x1xf32>
    %c0_i32 = arith.constant 0 : i32
    %36 = vector.broadcast %c0_i32 : i32 to vector<8x1xi32>
    %37 = arith.cmpi ne, %1, %36 : vector<8x1xi32>
    %38 = arith.extui %37 : vector<8x1xi1> to vector<8x1xi32>
    %39 = arith.sitofp %38 : vector<8x1xi32> to vector<8x1xf32>
    %cst_15 = arith.constant 9.99999974E-6 : f32
    %40 = vector.broadcast %cst_15 : f32 to vector<8x1xf32>
    %41 = arith.addf %35, %40 : vector<8x1xf32>
    %42 = math.rsqrt %41 : vector<8x1xf32>
    %43 = arith.mulf %42, %39 : vector<8x1xf32>
    %44 = vector.broadcast %43 : vector<8x1xf32> to vector<8x128xf32>
    %45 = arith.mulf %30, %44 : vector<8x128xf32>
    %c0_16 = arith.constant 0 : index
    %c0_17 = arith.constant 0 : index
    %46 = vector.load %arg6[%c0_16, %c0_17] : memref<1x128xf32, #tpu.memory_space<vmem>>, vector<1x128xf32>
    %47 = vector.broadcast %46 : vector<1x128xf32> to vector<8x128xf32>
    %48 = arith.mulf %45, %47 : vector<8x128xf32>
    %c0_18 = arith.constant 0 : index
    %c0_19 = arith.constant 0 : index
    %49 = vector.load %arg7[%c0_18, %c0_19] : memref<1x128xf32, #tpu.memory_space<vmem>>, vector<1x128xf32>
    %50 = vector.broadcast %49 : vector<1x128xf32> to vector<8x128xf32>
    %51 = vector.broadcast %39 : vector<8x1xf32> to vector<8x128xf32>
    %52 = arith.mulf %50, %51 : vector<8x128xf32>
    %53 = arith.addf %48, %52 : vector<8x128xf32>
    %c0_20 = arith.constant 0 : index
    %c0_21 = arith.constant 0 : index
    %c0_22 = arith.constant 0 : index
    %54 = vector.load %arg9[%c0_20, %c0_21, %c0_22] : memref<1x8x128xf32, #tpu.memory_space<vmem>>, vector<1x8x128xf32>
    %55 = vector.shape_cast %54 : vector<1x8x128xf32> to vector<8x128xf32>
    %56 = vector.shape_cast %53 : vector<8x128xf32> to vector<1x8x128xf32>
    tpu.vector_store %arg9[%c0_20, %c0_21, %c0_22], %56 {strides = array<i32>} : memref<1x8x128xf32, #tpu.memory_space<vmem>>, vector<1x8x128xf32>,
    return
  }
  func.func @transform_0(%arg0: i32, %arg1: i32) -> (i32, i32, i32) {
    %c0_i32 = arith.constant 0 : i32
    %c0_i32_0 = arith.constant 0 : i32
    return %arg1, %arg0, %c0_i32 : i32, i32, i32
  }
  func.func @transform_1(%arg0: i32, %arg1: i32) -> (i32, i32) {
    %c0_i32 = arith.constant 0 : i32
    %c0_i32_0 = arith.constant 0 : i32
    %c0_i32_1 = arith.constant 0 : i32
    return %c0_i32, %c0_i32_0 : i32, i32
  }
  func.func @transform_2(%arg0: i32, %arg1: i32) -> (i32, i32) {
    %c0_i32 = arith.constant 0 : i32
    %c0_i32_0 = arith.constant 0 : i32
    %c0_i32_1 = arith.constant 0 : i32
    return %c0_i32, %c0_i32_0 : i32, i32
  }
  func.func @transform_3(%arg0: i32, %arg1: i32) -> (i32, i32) {
    %c0_i32 = arith.constant 0 : i32
    %c0_i32_0 = arith.constant 0 : i32
    return %arg0, %c0_i32 : i32, i32
  }
  func.func @transform_4(%arg0: i32, %arg1: i32) -> (i32, i32) {
    %c0_i32 = arith.constant 0 : i32
    %c0_i32_0 = arith.constant 0 : i32
    %c0_i32_1 = arith.constant 0 : i32
    return %c0_i32, %c0_i32_0 : i32, i32
  }
  func.func @transform_5(%arg0: i32, %arg1: i32) -> (i32, i32) {
    %c0_i32 = arith.constant 0 : i32
    %c0_i32_0 = arith.constant 0 : i32
    %c0_i32_1 = arith.constant 0 : i32
    return %c0_i32, %c0_i32_0 : i32, i32
  }
  func.func @transform_6(%arg0: i32, %arg1: i32) -> i32 {
    %c0_i32 = arith.constant 0 : i32
    %c0_i32_0 = arith.constant 0 : i32
    return %c0_i32 : i32
  }
  func.func @transform_7(%arg0: i32, %arg1: i32) -> (i32, i32, i32) {
    %c0_i32 = arith.constant 0 : i32
    %c0_i32_0 = arith.constant 0 : i32
    return %arg1, %arg0, %c0_i32 : i32, i32, i32
  }
}

</mosaic_0001>

<bundles_post_ra>
// kernel: tpu_custom_call.1
= control target key start
LH: loop header
LB: loop body
LE: loop exit
PB: predicated region body
PF: predicated region fallthrough
CT: control target
= control target key end

     0   :  { %s1491_s0 = inlined_call_operand.vmem [shape: s32[2,8,1], index: 0, kind: input, shape index: {}]   ;;  %s1492_s1 = inlined_call_operand.hbm [shape: bf16[256,128], index: 1, kind: input, shape index: {}]   ;;  %s1493_s2 = inlined_call_operand.hbm [shape: bf16[256,128], index: 2, kind: input, shape index: {}]   ;;  %s1494_s3 = inlined_call_operand.vmem [shape: f32[8,128], index: 3, kind: input, shape index: {}]   ;;  %s1495_s4 = inlined_call_operand.vmem [shape: f32[1,128], index: 4, kind: input, shape index: {}]   ;;  %s1496_s5 = inlined_call_operand.vmem [shape: f32[1,128], index: 5, kind: input, shape index: {}]   ;;  %s1497_s6 = inlined_call_operand.<no memory space> [shape: f32[1], index: 6, kind: input, shape index: {}]   ;;  %s1498_s7 = inlined_call_operand.hbm [shape: f32[2,8,128], index: 7, kind: output, shape index: {}]  }
   0x1   :  { %12 = sst [smem:[#allocation2]] %s1497_s6 }
   0x2   :  { %13 = vsyncpa [#allocation4], 0 }
   0x3   :  { %14 = vsyncpa [#allocation7], 0 }
   0x4   :  { %15 = vsyncpa [#allocation5], 0 }
   0x5   :  { %17 = vsyncpa [#allocation5 + $0x1], 0  ;;  %s1291_s26 = smov 0   ;;  %s1293_s27 = smov 0  }
   0x6   :  { %s1295_s28 = smov 0   ;;  %s1297_s29 = smov 0  }
   0x7   :  { %s1299_s30 = smov 0   ;;  %s1301_s8 = smov 0  }
   0x8 LB: > { %1505 = sst [smem:[#allocation12_spill]] %s1234_s30  ;;  %s874_s6 = sadd.s32 4294967295, %s1238_s8   ;;  %s1238_s8 = sphi %s1301_s8, %s23_s8   ;;  %s1234_s30 = sphi %s1299_s30, %s1517_s30   ;;  %s1230_s29 = sphi %s1297_s29, %s1516_s29   ;;  %s1226_s28 = sphi %s1295_s28, %s1520_s28   ;;  %s1222_s27 = sphi %s1293_s27, %s1519_s27   ;;  %s1218_s26 = sphi %s1291_s26, %s1518_s26  }
   0x9   : > { %s875_s9 = sadd.s32 4294967294, %s1238_s8   ;;  %s32_s10 = sadd.s32 1, %s1234_s30 }
   0xa   : > { %s203_s11 = sadd.s32 1, %s1226_s28  ;;  %p33_p0 = scmp.ge.s32.totalorder %s32_s10, 2 }
   0xb   : > { %p213_p1 = scmp.ne.s32.totalorder %s1226_s28, %s1222_s27  ;;  %p214_p2 = scmp.eq.s32.totalorder %s874_s6, 1 }
   0xc   : > { %p219_p3 = scmp.ne.s32.totalorder %s1222_s27, %s1218_s26  ;;  %s1522_s10 = smov (%p33_p0, %s32_s10), 0 }
   0xd   : > { %1506 = sst [smem:[#allocation13_spill]] %s1522_s10  ;;  %p1331_p4 = por %p214_p2, %p213_p1 }
   0xe   : > { %p220_p5 = scmp.eq.s32.totalorder %s875_s9, 1  ;;  %s198_s13 = ssub.s32 %s1234_s30, %s1522_s10 }
   0xf   : > { %s1507_s12 = scalar_select %p1331_p4, 1, 0 }
  0x10   : > { %p876_p6 = scmp.ge.s32.totalorder %s1238_s8, 1  ;;  %p201_p7 = scmp.eq.s32.totalorder %s198_s13, 0 }
  0x11   : > { %p1338_p8 = por %p220_p5, %p219_p3  ;;  %p227_p9 = scmp.lt.s32.totalorder %s1238_s8, 3 }
  0x12   : > { %s1344_s15 = scalar_select %p201_p7, %s1226_s28, %s203_s11  }
  0x13   : > { %s1508_s14 = scalar_select %p1338_p8, 1, 0 }
  0x14   : > { %p1346_p10 = pnand %p876_p6, %p227_p9  ;;  %p1350_p11 = scmp.eq.s32.totalorder %s874_s6, 0 }
  0x15   : > { %s1240_s18 = smov [#allocation3]   ;;  %s1241_s21 = smov [#allocation6]  }
  0x16   : > { %s1509_s16 = scalar_select %p1346_p10, 1, 0 }
  0x17   : > { %s1510_s17 = scalar_select %p1350_p11, 1, 0 }
  0x18   : > { %p989_p12 = pneg %p1346_p10  ;;  %s239_s19 = sshll.u32 %s1240_s18, 4  ;;  %s240_s19 = int_to_ptr.vmem [resolvable:$true] %s239_s19 }
  0x19   : > { %s252_s22 = sshll.u32 %s1241_s21, 4  ;;  %s1096_s25 = scalar_lea.hbm %s1492_s1, 2048  ;;  %s1362_s22 = int_to_ptr.vmem [resolvable:$true] %s252_s22 }
  0x1a   : > { %p1358_p13 = pnand %p1350_p11, %p989_p12  ;;  %p1097_p0 = scmp.ne.s32.totalorder %s1492_s1, %s1096_s25 }
  0x1b   : > { %p1103_p5 = scmp.lt.u32.totalorder %s1096_s25, %s1492_s1 }
  0x1c   : > { %p1098_p1 = pneg %p1358_p13 }
  0x1e   : > { %p1099_p2 = pnand %p1098_p1, %p1097_p0 }
  0x20   : > { %p1100_p3 = pneg %p1099_p2 }
  0x22   : > { %p1105_p6 = pnand %p1103_p5, %p1100_p3 }
  0x24   : > { %1108 = shalt.err (!%p1105_p6)
}
  0x25   : > { %s1109_s18 = scalar_lea.vmem %s240_s19, 2048  ;;  %p1117_p8 = scmp.lt.s32.totalorder %s240_s19, %s240_s19 }
  0x26   : > { %p1110_p7 = scmp.ne.s32.totalorder %s240_s19, %s1109_s18  ;;  %p1118_p4 = scmp.lt.s32.totalorder %s1109_s18, %s1109_s18 }
  0x28   : > { %p1112_p9 = pnand %p1110_p7, %p1098_p1  ;;  %p1119_p11 = por %p1118_p4, %p1117_p8 }
  0x2a   : > { %p1113_p12 = pneg %p1112_p9 }
  0x2c   : > { %p1120_p10 = pnand %p1119_p11, %p1113_p12 }
  0x2e   : > { %1123 = shalt.err (!%p1120_p10)
}
  0x2f   : > { %s1242_s21 = smov 64   ;;  %s1243_s23 = smov 4  }
  0x30   : > { %992 = dma.hbm_to_vmem [thread:$0]  (!%p1358_p13), %s1492_s1, 2048, %s240_s19, [#allocation4], %s1242_s21, %s1242_s21, %s1243_s23  }
  0x31   : > { %s1124_s11 = scalar_lea.hbm %s1493_s2, 2048 }
  0x32   : > { %p1125_p0 = scmp.ne.s32.totalorder %s1493_s2, %s1124_s11  ;;  %p1131_p10 = scmp.lt.u32.totalorder %s1124_s11, %s1493_s2 }
  0x34   : > { %p1127_p4 = pnand %p1125_p0, %p1098_p1 }
  0x36   : > { %p1128_p8 = pneg %p1127_p4 }
  0x38   : > { %p1133_p11 = pnand %p1131_p10, %p1128_p8 }
  0x3a   : > { %1136 = shalt.err (!%p1133_p11)
}
  0x3b   : > { %s1137_s19 = scalar_lea.vmem %s1362_s22, 2048  ;;  %p1145_p6 = scmp.lt.s32.totalorder %s1362_s22, %s1362_s22 }
  0x3c   : > { %p1138_p2 = scmp.ne.s32.totalorder %s1362_s22, %s1137_s19  ;;  %p1146_p7 = scmp.lt.s32.totalorder %s1137_s19, %s1137_s19 }
  0x3e   : > { %p1140_p3 = pnand %p1138_p2, %p1098_p1  ;;  %p1147_p9 = por %p1146_p7, %p1145_p6 }
  0x40   : > { %p1141_p5 = pneg %p1140_p3 }
  0x42   : > { %p1148_p12 = pnand %p1147_p9, %p1141_p5 }
  0x44   : > { %1151 = shalt.err (!%p1148_p12)
}
  0x45   : > { %995 = dma.hbm_to_vmem [thread:$0]  (!%p1358_p13), %s1493_s2, 2048, %s1362_s22, [#allocation7], %s1242_s21, %s1242_s21, %s1243_s23  }
  0x46   : > { %p1512_p0 = scmp.ne.s32.totalorder %s1509_s16, 0 }
  0x47   : > { %p1513_p4 = scmp.ne.s32.totalorder (!%p1512_p0), %s1510_s17, 0 }
  0x48   : > { %294 = sbr.rel (%p1512_p0) target bundleno = 898 (0x382), region = 48 }
  0x4f   : > { %1205 = dma.done.wait (%p1513_p4), [#allocation4], 2048  }
  0x50   : > { %1207 = vsyncadd (%p1513_p4), [#allocation4], 4294965248 }
  0x51   : > { %1209 = dma.done.wait (%p1513_p4), [#allocation7], 2048  }
  0x52   : > { %1211 = vsyncadd (%p1513_p4), [#allocation7], 4294965248  ;;  %p336_p1 = scmp.lt.s32.totalorder %s1230_s29, 1  ;;  %v1244_v0 = vmov 0   ;;  %v1062_v2 = vld [vmem:[#allocation6 + $0x40] sm:$0xff]   ;;  %v1066_v6 = vld [vmem:[#allocation6 + $0x48] sm:$0xff]   ;;  %v349_v34 = vlaneseq }
  0x53   : > { %1060 = vset.pattern.permute.xlu0 %v1244_v0  ;;  %1061 = vset.pattern.permute.xlu1 %v1244_v0  ;;  %v1063_v3 = vld [vmem:[#allocation3 + $0x40] sm:$0xff]   ;;  %v1067_v7 = vld [vmem:[#allocation3 + $0x48] sm:$0xff]   ;;  %v1070_v10 = vld [vmem:[#allocation6 + $0x50] sm:$0xff]   ;;  %v1245_v38 = vmov 1.0|1.0   ;;  %s699_s17 = sld [smem:[#allocation2]] }
  0x54   : > { %s337_s16 = scalar_select %p336_p1, %s1230_s29, 1  ;;  %935 = vmatprep.subr.bf16.mxu0 %v1062_v2  ;;  %v1064_v4 = vld [vmem:[#allocation6] sm:$0xff]   ;;  %957 = vmatprep.subr.bf16.mxu1 %v1063_v3  ;;  %v1068_v8 = vld [vmem:[#allocation6 + $0x8] sm:$0xff]   ;;  %v1071_v11 = vld [vmem:[#allocation3 + $0x50] sm:$0xff]   ;;  %v350_v35 = vand.u32 127, %v349_v34  ;;  %v1246_v62 = vmov 0.0  }
  0x55   : > { %v1065_v5 = vld [vmem:[#allocation3] sm:$0xff]   ;;  %936 = vmatpush3.bf16.msra.mxu0 %v1064_v4  ;;  %v1069_v9 = vld [vmem:[#allocation3 + $0x8] sm:$0xff]   ;;  %v1072_v12 = vld [vmem:[#allocation6 + $0x10] sm:$0xff]   ;;  %s333_s6 = sand.u32 1, %s1222_s27   ;;  %s932_s30 = sshll.u32 %s1230_s29, 7 }
  0x56   : > { %s885_s20 = sshll.u32 %s337_s16, 3  ;;  %958 = vmatpush3.bf16.msra.mxu1 %v1065_v5  ;;  %937 = vmatprep.subr.bf16.mxu0 %v1066_v6  ;;  %v1073_v13 = vld [vmem:[#allocation3 + $0x10] sm:$0xff]   ;;  %v1074_v14 = vld [vmem:[#allocation6 + $0x58] sm:$0xff]   ;;  %v1078_v18 = vld [vmem:[#allocation6 + $0x60] sm:$0xff]   ;;  %v351_v36 = vadd.s32 128, %v350_v35  ;;  %vm708_vm4 = vcmp.lt.s32.totalorder %v350_v35, 32  ;;  %s1444_s21 = scalar_lea.hbm %s1498_s7, %s932_s30 }
  0x57   : > { %s342_s23 = scalar_lea.vmem %s1491_s0, %s885_s20  ;;  %959 = vmatprep.subr.bf16.mxu1 %v1067_v7  ;;  %v1075_v15 = vld [vmem:[#allocation3 + $0x58] sm:$0xff]   ;;  %v1079_v19 = vld [vmem:[#allocation3 + $0x60] sm:$0xff]   ;;  %v1082_v22 = vld [vmem:[#allocation6 + $0x68] sm:$0xff]   ;;  %s884_s9 = sshll.u32 %s333_s6, 3 }
  0x58   : > { %v1426_v1 = vld [vmem:[%s342_s23] sm:$0xff]  ;;  %v1076_v16 = vld [vmem:[#allocation6 + $0x18] sm:$0xff]   ;;  %v1083_v23 = vld [vmem:[#allocation3 + $0x68] sm:$0xff]   ;;  %s335_s10 = scalar_lea.vmem [#allocation8], %s884_s9  ;;  %s752_s23 = scalar_lea.sflag [#allocation5], %s333_s6 }
  0x59   : > { %353 = vperm.xlu0 %1060, %v1426_v1   ;;  %938 = vmatpush3.bf16.msra.mxu0 %v1068_v8  ;;  %v1077_v17 = vld [vmem:[#allocation3 + $0x18] sm:$0xff]   ;;  %v1080_v20 = vld [vmem:[#allocation6 + $0x20] sm:$0xff]   ;;  %v1084_v24 = vld [vmem:[#allocation6 + $0x28] sm:$0xff]   ;;  %v701_v40 = vstv %s699_s17  ;;  %vm716_vm5 = vcmp.ne.s32.totalorder %v1426_v1, 0  ;;  %s766_s16 = sshll.u32 %s335_s10, 4  ;;  %p1514_p8 = scmp.ne.s32.totalorder %s1507_s12, 0  ;;  %s1446_s16 = int_to_ptr.vmem [resolvable:$true] %s766_s16 }
  0x5a   : > { %960 = vmatpush3.bf16.msra.mxu1 %v1069_v9  ;;  %939 = vmatprep.subr.bf16.mxu0 %v1070_v10  ;;  %v1081_v21 = vld [vmem:[#allocation3 + $0x20] sm:$0xff]   ;;  %v1085_v25 = vld [vmem:[#allocation3 + $0x28] sm:$0xff]   ;;  %v1086_v26 = vld [vmem:[#allocation6 + $0x70] sm:$0xff]   ;;  %v928_v63 = vsel %vm716_vm5, 1.0, %v1246_v62  ;;  %s1152_s17 = scalar_lea.vmem %s1446_s16, 128  ;;  %s1247_s29 = smov [#allocation8]  }
  0x5b   : > { %961 = vmatprep.subr.bf16.mxu1 %v1071_v11  ;;  %v1087_v27 = vld [vmem:[#allocation3 + $0x70] sm:$0xff]   ;;  %v1090_v30 = vld [vmem:[#allocation6 + $0x78] sm:$0xff]   ;;  %v700_v39 = vld [vmem:[%s1494_s3] sm:$0xff]  ;;  %p1153_p13 = scmp.ne.s32.totalorder %s1446_s16, %s1152_s17  ;;  %s1156_s24 = sshll.u32 %s1247_s29, 4  ;;  %s1157_s24 = int_to_ptr.vmem [resolvable:$false] %s1156_s24 }
  0x5c   : > { %v1088_v28 = vld [vmem:[#allocation6 + $0x30] sm:$0xff]   ;;  %v1091_v31 = vld [vmem:[#allocation3 + $0x78] sm:$0xff]   ;;  %v702_v49 = vmul.f32 %v701_v40, %v700_v39  ;;  %v929_v5 = vld [vmem:[%s1495_s4] ss:$0 sm:$0xff]  ;;  %s1158_s25 = scalar_lea.vmem %s1157_s24, 256  ;;  %p1159_p2 = scmp.lt.s32.totalorder %s1446_s16, %s1157_s24 }
  0x5d   : > { %940 = vmatpush3.bf16.msra.mxu0 %v1072_v12  ;;  %v1089_v29 = vld [vmem:[#allocation3 + $0x30] sm:$0xff]   ;;  %v1092_v32 = vld [vmem:[#allocation6 + $0x38] sm:$0xff]   ;;  %v930_v6 = vld [vmem:[%s1496_s5] ss:$0 sm:$0xff]  ;;  %p1154_p10 = pnand %p1153_p13, %p1514_p8  ;;  %p1160_p3 = scmp.lt.s32.totalorder %s1158_s25, %s1152_s17 }
  0x5e   : > { %962 = vmatpush3.bf16.msra.mxu1 %v1073_v13  ;;  %941 = vmatprep.subr.bf16.mxu0 %v1074_v14  ;;  %v1093_v33 = vld [vmem:[#allocation3 + $0x38] sm:$0xff]  }
  0x5f   : > { %963 = vmatprep.subr.bf16.mxu1 %v1075_v15  ;;  %p1155_p11 = pneg %p1154_p10  ;;  %p1161_p5 = por %p1160_p3, %p1159_p2 }
  0x61   : > { %942 = vmatpush3.bf16.msra.mxu0 %v1076_v16  ;;  %p1162_p6 = pnand %p1161_p5, %p1155_p11 }
  0x62   : > { %964 = vmatpush3.bf16.msra.mxu1 %v1077_v17  ;;  %943 = vmatprep.subr.bf16.mxu0 %v1078_v18 }
  0x63   : > { %965 = vmatprep.subr.bf16.mxu1 %v1079_v19 }
  0x65   : > { %944 = vmatpush3.bf16.msra.mxu0 %v1080_v20 }
  0x66   : > { %966 = vmatpush3.bf16.msra.mxu1 %v1081_v21  ;;  %945 = vmatprep.subr.bf16.mxu0 %v1082_v22 }
  0x67   : > { %967 = vmatprep.subr.bf16.mxu1 %v1083_v23 }
  0x69   : > { %946 = vmatpush3.bf16.msra.mxu0 %v1084_v24 }
  0x6a   : > { %968 = vmatpush3.bf16.msra.mxu1 %v1085_v25  ;;  %947 = vmatprep.subr.bf16.mxu0 %v1086_v26 }
  0x6b   : > { %969 = vmatprep.subr.bf16.mxu1 %v1087_v27 }
  0x6d   : > { %948 = vmatpush3.bf16.msra.mxu0 %v1088_v28 }
  0x6e   : > { %970 = vmatpush3.bf16.msra.mxu1 %v1089_v29  ;;  %949 = vmatprep.subr.bf16.mxu0 %v1090_v30 }
  0x6f   : > { %971 = vmatprep.subr.bf16.mxu1 %v1091_v31 }
  0x71   : > { %950 = vmatpush3.bf16.msra.mxu0 %v1092_v32 }
  0x72   : > { %972 = vmatpush3.bf16.msra.mxu1 %v1093_v33 }
  0xd8   : > { %v354_v37 = vpop.permute.xlu0 %353 }
  0xd9   : > { %vm355_vm0 = vcmp.eq.s32.totalorder %v354_v37, %v350_v35  ;;  %vm356_vm1 = vcmp.eq.s32.totalorder %v354_v37, %v351_v36 }
  0xda   : > { %vm906_vm2 = vmpackc.low %vm355_vm0, %vm355_vm0 }
  0xdb   : > { %vm904_vm3 = vmpackc.low %vm356_vm1, %vm356_vm1 }
  0xdc   : > { %905 = vmatprep.mubr.msk.bf16.mxu0 %vm904_vm3, %v1245_v38  ;;  %925 = vmatprep.mubr.msk.bf16.mxu1 %vm904_vm3, %v1245_v38 }
  0xdd   : > { %907 = vmatmul.mubr.msk.bf16.vlgmr.msra.gmra.mrb[0].mxu0 %vm906_vm2, %v1245_v38  ;;  %927 = vmatmul.mubr.msk.bf16.vlgmr.msra.gmra.mrb[0].mxu1 %vm906_vm2, %v1245_v38 }
 0x1b0   : > { %v951_v41 = vpop.f32.mrb[0].mxu0  ;;  %v973_v42 = vpop.f32.mrb[0].mxu1 }
 0x1b1   : > { %v952_v43 = vpop.f32.mrb[1].mxu0  ;;  %v974_v44 = vpop.f32.mrb[1].mxu1 }
 0x1b2   : > { %v953_v45 = vadd.f32 %v952_v43, %v951_v41  ;;  %v975_v46 = vadd.f32 %v974_v44, %v973_v42  ;;  %v954_v47 = vpop.f32.mrb[2].mxu0  ;;  %v976_v48 = vpop.f32.mrb[2].mxu1 }
 0x1b3   : > { %v955_v50 = vpop.f32.mrb[3].mxu0  ;;  %v977_v51 = vpop.f32.mrb[3].mxu1 }
 0x1b4   : > { %v694_v52 = vadd.f32 %v975_v46, %v953_v45 }
 0x1b6   : > { %v703_v53 = vadd.f32 %v702_v49, %v694_v52 }
 0x1b8   : > { %704 = vadd.xlane.f32.xlu0 %v703_v53 }
 0x245   : > { %v705_v54 = vpop.xlane.xlu0 %704 }
 0x246   : > { %v706_v55 = vmul.f32 0.03125, %v705_v54 }
 0x248   : > { %v707_v56 = vsub.f32 %v703_v53, %v706_v55 }
 0x24a   : > { %v711_v57 = vsel %vm708_vm4, %v707_v56, 0.0 }
 0x24b   : > { %v712_v58 = vmul.f32 %v711_v57, %v711_v57 }
 0x24d   : > { %713 = vadd.xlane.f32.xlu1 %v712_v58 }
 0x2da   : > { %v714_v59 = vpop.xlane.xlu1 %713 }
 0x2db   : > { %v715_v60 = vmul.f32 0.03125, %v714_v59 }
 0x2dd   : > { %v719_v61 = vadd.f32 1e-05, %v715_v60 }
 0x2df   : > { %1094 = vrsqrt.f32 %v719_v61 }
 0x2e9   : > { %v1095_v0 = vpop.eup %1094 }
 0x2ea   : > { %v721_v2 = vmul.f32 %v1095_v0, %v928_v63 }
 0x2ec   : > { %724 = vperm.xlu1 %1061, %v721_v2  }
 0x2f0   : > { %745 = vperm.xlu1 %1061, %v928_v63  }
 0x36b   : > { %v725_v3 = vpop.permute.xlu1 %724 }
 0x36c   : > { %v727_v4 = vmul.f32 %v725_v3, %v711_v57 }
 0x36e   : > { %v735_v7 = vmul.f32 %v929_v5, %v727_v4 }
 0x36f   : > { %v746_v1 = vpop.permute.xlu1 %745 }
 0x370   : > { %v748_v8 = vmul.f32 %v930_v6, %v746_v1 }
 0x372   : > { %v749_v9 = vadd.f32 %v748_v8, %v735_v7 }
 0x374   : > { %750 = vst [vmem:[%s335_s10] sm:$0xff] %v749_v9 }
 0x375   : > { %1165 = shalt.err (!%p1162_p6)
}
 0x376   : > { %s1166_s6 = scalar_lea.hbm %s1444_s21, 128  ;;  %s1170_s13 = scalar_lea.hbm %s1498_s7, 256 }
 0x377   : > { %p1167_p7 = scmp.ne.s32.totalorder %s1444_s21, %s1166_s6  ;;  %p1171_p0 = scmp.lt.u32.totalorder %s1444_s21, %s1498_s7 }
 0x378   : > { %p1172_p4 = scmp.lt.u32.totalorder %s1170_s13, %s1166_s6  ;;  %p1174_p13 = scmp.lt.u32.totalorder %s1166_s6, %s1444_s21 }
 0x379   : > { %p1168_p9 = pnand %p1167_p7, %p1514_p8 }
 0x37a   : > { %p1173_p1 = por %p1172_p4, %p1171_p0 }
 0x37b   : > { %p1169_p12 = pneg %p1168_p9 }
 0x37c   : > { %p1175_p10 = por %p1174_p13, %p1173_p1 }
 0x37e   : > { %p1176_p11 = pnand %p1175_p10, %p1169_p12 }
 0x380   : > { %1179 = shalt.err (!%p1176_p11)
}
 0x381   : > { %987 = dma.vmem_to_hbm [thread:$0]  (%p1514_p8), %s1446_s16, 128, %s1444_s21, %s752_s23  }
 0x382 PF: > { %p1004_p2 = scmp.ge.s32.totalorder %s1238_s8, 2  ;;  %s778_s30 = sand.u32 1, %s1218_s26  }
 0x383   : > { %p1515_p3 = scmp.ne.s32.totalorder %s1508_s14, 0  ;;  %s779_s10 = scalar_lea.sflag [#allocation5], %s778_s30 }
 0x385   : > { %p997_p5 = pnand %p1004_p2, %p1515_p3 }
 0x387   : > { %1213 = dma.done.wait (!%p997_p5), %s779_s10, 128  }
 0x388   : > { %1215 = vsyncadd (!%p997_p5), %s779_s10, 4294967168  ;;  %s23_s8 = sadd.s32 1, %s1238_s8   ;;  %s1516_s29 = sld [smem:[#allocation12_spill]] }
 0x389   : > { %p20_p6 = scmp.ge.s32.totalorder %s23_s8, 4   ;;  %s1517_s30 = sld [smem:[#allocation13_spill]] }
 0x38a   : > { %s1518_s26 = smov %s1222_s27  ;;  %s1519_s27 = smov %s1226_s28 }
 0x38b   : > { %s1520_s28 = smov %s1344_s15  ;;  %22 = sbr.rel (!%p20_p6) target bundleno = 8 (0x8), region = 95 }
 0x392   :  { %784 = vsyncpa [#allocation4], 1 }
 0x393   :  { %786 = vsyncpa [#allocation4 + $0x1], 1 }
 0x394   :  { %787 = vsyncpa [#allocation7], 1 }
 0x395   :  { %788 = vsyncpa [#allocation5], 1 }
 0x396   :  { %790 = vsyncpa [#allocation5 + $0x1], 1 }

// kernel: tpu_custom_call.1
= control target key start
LH: loop header
LB: loop body
LE: loop exit
PB: predicated region body
PF: predicated region fallthrough
CT: control target
= control target key end

     0   :  { %s1491_s0 = inlined_call_operand.vmem [shape: s32[2,8,1], index: 0, kind: input, shape index: {}]   ;;  %s1492_s1 = inlined_call_operand.hbm [shape: bf16[256,128], index: 1, kind: input, shape index: {}]   ;;  %s1493_s2 = inlined_call_operand.hbm [shape: bf16[256,128], index: 2, kind: input, shape index: {}]   ;;  %s1494_s3 = inlined_call_operand.vmem [shape: f32[8,128], index: 3, kind: input, shape index: {}]   ;;  %s1495_s4 = inlined_call_operand.vmem [shape: f32[1,128], index: 4, kind: input, shape index: {}]   ;;  %s1496_s5 = inlined_call_operand.vmem [shape: f32[1,128], index: 5, kind: input, shape index: {}]   ;;  %s1497_s6 = inlined_call_operand.<no memory space> [shape: f32[1], index: 6, kind: input, shape index: {}]   ;;  %s1498_s7 = inlined_call_operand.hbm [shape: f32[2,8,128], index: 7, kind: output, shape index: {}]  }
   0x1   :  { %12 = sst [smem:[#allocation2]] %s1497_s6 }
   0x2   :  { %13 = vsyncpa [#allocation4], 0 }
   0x3   :  { %14 = vsyncpa [#allocation7], 0 }
   0x4   :  { %15 = vsyncpa [#allocation5], 0 }
   0x5   :  { %17 = vsyncpa [#allocation5 + $0x1], 0  ;;  %s1291_s26 = smov 0   ;;  %s1293_s27 = smov 0  }
   0x6   :  { %s1295_s28 = smov 0   ;;  %s1297_s29 = smov 0  }
   0x7   :  { %s1299_s30 = smov 0   ;;  %s1301_s8 = smov 0  }
   0x8 LB: > { %1505 = sst [smem:[#allocation12_spill]] %s1234_s30  ;;  %s874_s6 = sadd.s32 4294967295, %s1238_s8   ;;  %s1238_s8 = sphi %s1301_s8, %s23_s8   ;;  %s1234_s30 = sphi %s1299_s30, %s1517_s30   ;;  %s1230_s29 = sphi %s1297_s29, %s1516_s29   ;;  %s1226_s28 = sphi %s1295_s28, %s1520_s28   ;;  %s1222_s27 = sphi %s1293_s27, %s1519_s27   ;;  %s1218_s26 = sphi %s1291_s26, %s1518_s26  }
   0x9   : > { %s875_s9 = sadd.s32 4294967294, %s1238_s8   ;;  %s32_s10 = sadd.s32 1, %s1234_s30 }
   0xa   : > { %s203_s11 = sadd.s32 1, %s1226_s28  ;;  %p33_p0 = scmp.ge.s32.totalorder %s32_s10, 2 }
   0xb   : > { %p213_p1 = scmp.ne.s32.totalorder %s1226_s28, %s1222_s27  ;;  %p214_p2 = scmp.eq.s32.totalorder %s874_s6, 1 }
   0xc   : > { %p219_p3 = scmp.ne.s32.totalorder %s1222_s27, %s1218_s26  ;;  %s1522_s10 = smov (%p33_p0, %s32_s10), 0 }
   0xd   : > { %1506 = sst [smem:[#allocation13_spill]] %s1522_s10  ;;  %p1331_p4 = por %p214_p2, %p213_p1 }
   0xe   : > { %p220_p5 = scmp.eq.s32.totalorder %s875_s9, 1  ;;  %s198_s13 = ssub.s32 %s1234_s30, %s1522_s10 }
   0xf   : > { %s1507_s12 = scalar_select %p1331_p4, 1, 0 }
  0x10   : > { %p876_p6 = scmp.ge.s32.totalorder %s1238_s8, 1  ;;  %p201_p7 = scmp.eq.s32.totalorder %s198_s13, 0 }
  0x11   : > { %p1338_p8 = por %p220_p5, %p219_p3  ;;  %p227_p9 = scmp.lt.s32.totalorder %s1238_s8, 3 }
  0x12   : > { %s1344_s15 = scalar_select %p201_p7, %s1226_s28, %s203_s11  }
  0x13   : > { %s1508_s14 = scalar_select %p1338_p8, 1, 0 }
  0x14   : > { %p1346_p10 = pnand %p876_p6, %p227_p9  ;;  %p1350_p11 = scmp.eq.s32.totalorder %s874_s6, 0 }
  0x15   : > { %s1240_s18 = smov [#allocation3]   ;;  %s1241_s21 = smov [#allocation6]  }
  0x16   : > { %s1509_s16 = scalar_select %p1346_p10, 1, 0 }
  0x17   : > { %s1510_s17 = scalar_select %p1350_p11, 1, 0 }
  0x18   : > { %p989_p12 = pneg %p1346_p10  ;;  %s239_s19 = sshll.u32 %s1240_s18, 4  ;;  %s240_s19 = int_to_ptr.vmem [resolvable:$true] %s239_s19 }
  0x19   : > { %s252_s22 = sshll.u32 %s1241_s21, 4  ;;  %s1096_s25 = scalar_lea.hbm %s1492_s1, 2048  ;;  %s1362_s22 = int_to_ptr.vmem [resolvable:$true] %s252_s22 }
  0x1a   : > { %p1358_p13 = pnand %p1350_p11, %p989_p12  ;;  %p1097_p0 = scmp.ne.s32.totalorder %s1492_s1, %s1096_s25 }
  0x1b   : > { %p1103_p5 = scmp.lt.u32.totalorder %s1096_s25, %s1492_s1 }
  0x1c   : > { %p1098_p1 = pneg %p1358_p13 }
  0x1e   : > { %p1099_p2 = pnand %p1098_p1, %p1097_p0 }
  0x20   : > { %p1100_p3 = pneg %p1099_p2 }
  0x22   : > { %p1105_p6 = pnand %p1103_p5, %p1100_p3 }
  0x24   : > { %1108 = shalt.err (!%p1105_p6)
}
  0x25   : > { %s1109_s18 = scalar_lea.vmem %s240_s19, 2048  ;;  %p1117_p8 = scmp.lt.s32.totalorder %s240_s19, %s240_s19 }
  0x26   : > { %p1110_p7 = scmp.ne.s32.totalorder %s240_s19, %s1109_s18  ;;  %p1118_p4 = scmp.lt.s32.totalorder %s1109_s18, %s1109_s18 }
  0x28   : > { %p1112_p9 = pnand %p1110_p7, %p1098_p1  ;;  %p1119_p11 = por %p1118_p4, %p1117_p8 }
  0x2a   : > { %p1113_p12 = pneg %p1112_p9 }
  0x2c   : > { %p1120_p10 = pnand %p1119_p11, %p1113_p12 }
  0x2e   : > { %1123 = shalt.err (!%p1120_p10)
}
  0x2f   : > { %s1242_s21 = smov 64   ;;  %s1243_s23 = smov 4  }
  0x30   : > { %992 = dma.hbm_to_vmem [thread:$0]  (!%p1358_p13), %s1492_s1, 2048, %s240_s19, [#allocation4], %s1242_s21, %s1242_s21, %s1243_s23  }
  0x31   : > { %s1124_s11 = scalar_lea.hbm %s1493_s2, 2048 }
  0x32   : > { %p1125_p0 = scmp.ne.s32.totalorder %s1493_s2, %s1124_s11  ;;  %p1131_p10 = scmp.lt.u32.totalorder %s1124_s11, %s1493_s2 }
  0x34   : > { %p1127_p4 = pnand %p1125_p0, %p1098_p1 }
  0x36   : > { %p1128_p8 = pneg %p1127_p4 }
  0x38   : > { %p1133_p11 = pnand %p1131_p10, %p1128_p8 }
  0x3a   : > { %1136 = shalt.err (!%p1133_p11)
}
  0x3b   : > { %s1137_s19 = scalar_lea.vmem %s1362_s22, 2048  ;;  %p1145_p6 = scmp.lt.s32.totalorder %s1362_s22, %s1362_s22 }
  0x3c   : > { %p1138_p2 = scmp.ne.s32.totalorder %s1362_s22, %s1137_s19  ;;  %p1146_p7 = scmp.lt.s32.totalorder %s1137_s19, %s1137_s19 }
  0x3e   : > { %p1140_p3 = pnand %p1138_p2, %p1098_p1  ;;  %p1147_p9 = por %p1146_p7, %p1145_p6 }
  0x40   : > { %p1141_p5 = pneg %p1140_p3 }
  0x42   : > { %p1148_p12 = pnand %p1147_p9, %p1141_p5 }
  0x44   : > { %1151 = shalt.err (!%p1148_p12)
}
  0x45   : > { %995 = dma.hbm_to_vmem [thread:$0]  (!%p1358_p13), %s1493_s2, 2048, %s1362_s22, [#allocation7], %s1242_s21, %s1242_s21, %s1243_s23  }
  0x46   : > { %p1512_p0 = scmp.ne.s32.totalorder %s1509_s16, 0 }
  0x47   : > { %p1513_p4 = scmp.ne.s32.totalorder (!%p1512_p0), %s1510_s17, 0 }
  0x48   : > { %294 = sbr.rel (%p1512_p0) target bundleno = 898 (0x382), region = 48 }
  0x4f   : > { %1205 = dma.done.wait (%p1513_p4), [#allocation4], 2048  }
  0x50   : > { %1207 = vsyncadd (%p1513_p4), [#allocation4], 4294965248 }
  0x51   : > { %1209 = dma.done.wait (%p1513_p4), [#allocation7], 2048  }
  0x52   : > { %1211 = vsyncadd (%p1513_p4), [#allocation7], 4294965248  ;;  %p336_p1 = scmp.lt.s32.totalorder %s1230_s29, 1  ;;  %v1244_v0 = vmov 0   ;;  %v1062_v2 = vld [vmem:[#allocation6 + $0x40] sm:$0xff]   ;;  %v1066_v6 = vld [vmem:[#allocation6 + $0x48] sm:$0xff]   ;;  %v349_v34 = vlaneseq }
  0x53   : > { %1060 = vset.pattern.permute.xlu0 %v1244_v0  ;;  %1061 = vset.pattern.permute.xlu1 %v1244_v0  ;;  %v1063_v3 = vld [vmem:[#allocation3 + $0x40] sm:$0xff]   ;;  %v1067_v7 = vld [vmem:[#allocation3 + $0x48] sm:$0xff]   ;;  %v1070_v10 = vld [vmem:[#allocation6 + $0x50] sm:$0xff]   ;;  %v1245_v38 = vmov 1.0|1.0   ;;  %s699_s17 = sld [smem:[#allocation2]] }
  0x54   : > { %s337_s16 = scalar_select %p336_p1, %s1230_s29, 1  ;;  %935 = vmatprep.subr.bf16.mxu0 %v1062_v2  ;;  %v1064_v4 = vld [vmem:[#allocation6] sm:$0xff]   ;;  %957 = vmatprep.subr.bf16.mxu1 %v1063_v3  ;;  %v1068_v8 = vld [vmem:[#allocation6 + $0x8] sm:$0xff]   ;;  %v1071_v11 = vld [vmem:[#allocation3 + $0x50] sm:$0xff]   ;;  %v350_v35 = vand.u32 127, %v349_v34  ;;  %v1246_v62 = vmov 0.0  }
  0x55   : > { %v1065_v5 = vld [vmem:[#allocation3] sm:$0xff]   ;;  %936 = vmatpush3.bf16.msra.mxu0 %v1064_v4  ;;  %v1069_v9 = vld [vmem:[#allocation3 + $0x8] sm:$0xff]   ;;  %v1072_v12 = vld [vmem:[#allocation6 + $0x10] sm:$0xff]   ;;  %s333_s6 = sand.u32 1, %s1222_s27   ;;  %s932_s30 = sshll.u32 %s1230_s29, 7 }
  0x56   : > { %s885_s20 = sshll.u32 %s337_s16, 3  ;;  %958 = vmatpush3.bf16.msra.mxu1 %v1065_v5  ;;  %937 = vmatprep.subr.bf16.mxu0 %v1066_v6  ;;  %v1073_v13 = vld [vmem:[#allocation3 + $0x10] sm:$0xff]   ;;  %v1074_v14 = vld [vmem:[#allocation6 + $0x58] sm:$0xff]   ;;  %v1078_v18 = vld [vmem:[#allocation6 + $0x60] sm:$0xff]   ;;  %v351_v36 = vadd.s32 128, %v350_v35  ;;  %vm708_vm4 = vcmp.lt.s32.totalorder %v350_v35, 32  ;;  %s1444_s21 = scalar_lea.hbm %s1498_s7, %s932_s30 }
  0x57   : > { %s342_s23 = scalar_lea.vmem %s1491_s0, %s885_s20  ;;  %959 = vmatprep.subr.bf16.mxu1 %v1067_v7  ;;  %v1075_v15 = vld [vmem:[#allocation3 + $0x58] sm:$0xff]   ;;  %v1079_v19 = vld [vmem:[#allocation3 + $0x60] sm:$0xff]   ;;  %v1082_v22 = vld [vmem:[#allocation6 + $0x68] sm:$0xff]   ;;  %s884_s9 = sshll.u32 %s333_s6, 3 }
  0x58   : > { %v1426_v1 = vld [vmem:[%s342_s23] sm:$0xff]  ;;  %v1076_v16 = vld [vmem:[#allocation6 + $0x18] sm:$0xff]   ;;  %v1083_v23 = vld [vmem:[#allocation3 + $0x68] sm:$0xff]   ;;  %s335_s10 = scalar_lea.vmem [#allocation8], %s884_s9  ;;  %s752_s23 = scalar_lea.sflag [#allocation5], %s333_s6 }
  0x59   : > { %353 = vperm.xlu0 %1060, %v1426_v1   ;;  %938 = vmatpush3.bf16.msra.mxu0 %v1068_v8  ;;  %v1077_v17 = vld [vmem:[#allocation3 + $0x18] sm:$0xff]   ;;  %v1080_v20 = vld [vmem:[#allocation6 + $0x20] sm:$0xff]   ;;  %v1084_v24 = vld [vmem:[#allocation6 + $0x28] sm:$0xff]   ;;  %v701_v40 = vstv %s699_s17  ;;  %vm716_vm5 = vcmp.ne.s32.totalorder %v1426_v1, 0  ;;  %s766_s16 = sshll.u32 %s335_s10, 4  ;;  %p1514_p8 = scmp.ne.s32.totalorder %s1507_s12, 0  ;;  %s1446_s16 = int_to_ptr.vmem [resolvable:$true] %s766_s16 }
  0x5a   : > { %960 = vmatpush3.bf16.msra.mxu1 %v1069_v9  ;;  %939 = vmatprep.subr.bf16.mxu0 %v1070_v10  ;;  %v1081_v21 = vld [vmem:[#allocation3 + $0x20] sm:$0xff]   ;;  %v1085_v25 = vld [vmem:[#allocation3 + $0x28] sm:$0xff]   ;;  %v1086_v26 = vld [vmem:[#allocation6 + $0x70] sm:$0xff]   ;;  %v928_v63 = vsel %vm716_vm5, 1.0, %v1246_v62  ;;  %s1152_s17 = scalar_lea.vmem %s1446_s16, 128  ;;  %s1247_s29 = smov [#allocation8]  }
  0x5b   : > { %961 = vmatprep.subr.bf16.mxu1 %v1071_v11  ;;  %v1087_v27 = vld [vmem:[#allocation3 + $0x70] sm:$0xff]   ;;  %v1090_v30 = vld [vmem:[#allocation6 + $0x78] sm:$0xff]   ;;  %v700_v39 = vld [vmem:[%s1494_s3] sm:$0xff]  ;;  %p1153_p13 = scmp.ne.s32.totalorder %s1446_s16, %s1152_s17  ;;  %s1156_s24 = sshll.u32 %s1247_s29, 4  ;;  %s1157_s24 = int_to_ptr.vmem [resolvable:$false] %s1156_s24 }
  0x5c   : > { %v1088_v28 = vld [vmem:[#allocation6 + $0x30] sm:$0xff]   ;;  %v1091_v31 = vld [vmem:[#allocation3 + $0x78] sm:$0xff]   ;;  %v702_v49 = vmul.f32 %v701_v40, %v700_v39  ;;  %v929_v5 = vld [vmem:[%s1495_s4] ss:$0 sm:$0xff]  ;;  %s1158_s25 = scalar_lea.vmem %s1157_s24, 256  ;;  %p1159_p2 = scmp.lt.s32.totalorder %s1446_s16, %s1157_s24 }
  0x5d   : > { %940 = vmatpush3.bf16.msra.mxu0 %v1072_v12  ;;  %v1089_v29 = vld [vmem:[#allocation3 + $0x30] sm:$0xff]   ;;  %v1092_v32 = vld [vmem:[#allocation6 + $0x38] sm:$0xff]   ;;  %v930_v6 = vld [vmem:[%s1496_s5] ss:$0 sm:$0xff]  ;;  %p1154_p10 = pnand %p1153_p13, %p1514_p8  ;;  %p1160_p3 = scmp.lt.s32.totalorder %s1158_s25, %s1152_s17 }
  0x5e   : > { %962 = vmatpush3.bf16.msra.mxu1 %v1073_v13  ;;  %941 = vmatprep.subr.bf16.mxu0 %v1074_v14  ;;  %v1093_v33 = vld [vmem:[#allocation3 + $0x38] sm:$0xff]  }
  0x5f   : > { %963 = vmatprep.subr.bf16.mxu1 %v1075_v15  ;;  %p1155_p11 = pneg %p1154_p10  ;;  %p1161_p5 = por %p1160_p3, %p1159_p2 }
  0x61   : > { %942 = vmatpush3.bf16.msra.mxu0 %v1076_v16  ;;  %p1162_p6 = pnand %p1161_p5, %p1155_p11 }
  0x62   : > { %964 = vmatpush3.bf16.msra.mxu1 %v1077_v17  ;;  %943 = vmatprep.subr.bf16.mxu0 %v1078_v18 }
  0x63   : > { %965 = vmatprep.subr.bf16.mxu1 %v1079_v19 }
  0x65   : > { %944 = vmatpush3.bf16.msra.mxu0 %v1080_v20 }
  0x66   : > { %966 = vmatpush3.bf16.msra.mxu1 %v1081_v21  ;;  %945 = vmatprep.subr.bf16.mxu0 %v1082_v22 }
  0x67   : > { %967 = vmatprep.subr.bf16.mxu1 %v1083_v23 }
  0x69   : > { %946 = vmatpush3.bf16.msra.mxu0 %v1084_v24 }
  0x6a   : > { %968 = vmatpush3.bf16.msra.mxu1 %v1085_v25  ;;  %947 = vmatprep.subr.bf16.mxu0 %v1086_v26 }
  0x6b   : > { %969 = vmatprep.subr.bf16.mxu1 %v1087_v27 }
  0x6d   : > { %948 = vmatpush3.bf16.msra.mxu0 %v1088_v28 }
  0x6e   : > { %970 = vmatpush3.bf16.msra.mxu1 %v1089_v29  ;;  %949 = vmatprep.subr.bf16.mxu0 %v1090_v30 }
  0x6f   : > { %971 = vmatprep.subr.bf16.mxu1 %v1091_v31 }
  0x71   : > { %950 = vmatpush3.bf16.msra.mxu0 %v1092_v32 }
  0x72   : > { %972 = vmatpush3.bf16.msra.mxu1 %v1093_v33 }
  0xd8   : > { %v354_v37 = vpop.permute.xlu0 %353 }
  0xd9   : > { %vm355_vm0 = vcmp.eq.s32.totalorder %v354_v37, %v350_v35  ;;  %vm356_vm1 = vcmp.eq.s32.totalorder %v354_v37, %v351_v36 }
  0xda   : > { %vm906_vm2 = vmpackc.low %vm355_vm0, %vm355_vm0 }
  0xdb   : > { %vm904_vm3 = vmpackc.low %vm356_vm1, %vm356_vm1 }
  0xdc   : > { %905 = vmatprep.mubr.msk.bf16.mxu0 %vm904_vm3, %v1245_v38  ;;  %925 = vmatprep.mubr.msk.bf16.mxu1 %vm904_vm3, %v1245_v38 }
  0xdd   : > { %907 = vmatmul.mubr.msk.bf16.vlgmr.msra.gmra.mrb[0].mxu0 %vm906_vm2, %v1245_v38  ;;  %927 = vmatmul.mubr.msk.bf16.vlgmr.msra.gmra.mrb[0].mxu1 %vm906_vm2, %v1245_v38 }
 0x1b0   : > { %v951_v41 = vpop.f32.mrb[0].mxu0  ;;  %v973_v42 = vpop.f32.mrb[0].mxu1 }
 0x1b1   : > { %v952_v43 = vpop.f32.mrb[1].mxu0  ;;  %v974_v44 = vpop.f32.mrb[1].mxu1 }
 0x1b2   : > { %v953_v45 = vadd.f32 %v952_v43, %v951_v41  ;;  %v975_v46 = vadd.f32 %v974_v44, %v973_v42  ;;  %v954_v47 = vpop.f32.mrb[2].mxu0  ;;  %v976_v48 = vpop.f32.mrb[2].mxu1 }
 0x1b3   : > { %v955_v50 = vpop.f32.mrb[3].mxu0  ;;  %v977_v51 = vpop.f32.mrb[3].mxu1 }
 0x1b4   : > { %v694_v52 = vadd.f32 %v975_v46, %v953_v45 }
 0x1b6   : > { %v703_v53 = vadd.f32 %v702_v49, %v694_v52 }
 0x1b8   : > { %704 = vadd.xlane.f32.xlu0 %v703_v53 }
 0x245   : > { %v705_v54 = vpop.xlane.xlu0 %704 }
 0x246   : > { %v706_v55 = vmul.f32 0.03125, %v705_v54 }
 0x248   : > { %v707_v56 = vsub.f32 %v703_v53, %v706_v55 }
 0x24a   : > { %v711_v57 = vsel %vm708_vm4, %v707_v56, 0.0 }
 0x24b   : > { %v712_v58 = vmul.f32 %v711_v57, %v711_v57 }
 0x24d   : > { %713 = vadd.xlane.f32.xlu1 %v712_v58 }
 0x2da   : > { %v714_v59 = vpop.xlane.xlu1 %713 }
 0x2db   : > { %v715_v60 = vmul.f32 0.03125, %v714_v59 }
 0x2dd   : > { %v719_v61 = vadd.f32 1e-05, %v715_v60 }
 0x2df   : > { %1094 = vrsqrt.f32 %v719_v61 }
 0x2e9   : > { %v1095_v0 = vpop.eup %1094 }
 0x2ea   : > { %v721_v2 = vmul.f32 %v1095_v0, %v928_v63 }
 0x2ec   : > { %724 = vperm.xlu1 %1061, %v721_v2  }
 0x2f0   : > { %745 = vperm.xlu1 %1061, %v928_v63  }
 0x36b   : > { %v725_v3 = vpop.permute.xlu1 %724 }
 0x36c   : > { %v727_v4 = vmul.f32 %v725_v3, %v711_v57 }
 0x36e   : > { %v735_v7 = vmul.f32 %v929_v5, %v727_v4 }
 0x36f   : > { %v746_v1 = vpop.permute.xlu1 %745 }
 0x370   : > { %v748_v8 = vmul.f32 %v930_v6, %v746_v1 }
 0x372   : > { %v749_v9 = vadd.f32 %v748_v8, %v735_v7 }
 0x374   : > { %750 = vst [vmem:[%s335_s10] sm:$0xff] %v749_v9 }
 0x375   : > { %1165 = shalt.err (!%p1162_p6)
}
 0x376   : > { %s1166_s6 = scalar_lea.hbm %s1444_s21, 128  ;;  %s1170_s13 = scalar_lea.hbm %s1498_s7, 256 }
 0x377   : > { %p1167_p7 = scmp.ne.s32.totalorder %s1444_s21, %s1166_s6  ;;  %p1171_p0 = scmp.lt.u32.totalorder %s1444_s21, %s1498_s7 }
 0x378   : > { %p1172_p4 = scmp.lt.u32.totalorder %s1170_s13, %s1166_s6  ;;  %p1174_p13 = scmp.lt.u32.totalorder %s1166_s6, %s1444_s21 }
 0x379   : > { %p1168_p9 = pnand %p1167_p7, %p1514_p8 }
 0x37a   : > { %p1173_p1 = por %p1172_p4, %p1171_p0 }
 0x37b   : > { %p1169_p12 = pneg %p1168_p9 }
 0x37c   : > { %p1175_p10 = por %p1174_p13, %p1173_p1 }
 0x37e   : > { %p1176_p11 = pnand %p1175_p10, %p1169_p12 }
 0x380   : > { %1179 = shalt.err (!%p1176_p11)
}
 0x381   : > { %987 = dma.vmem_to_hbm [thread:$0]  (%p1514_p8), %s1446_s16, 128, %s1444_s21, %s752_s23  }
 0x382 PF: > { %p1004_p2 = scmp.ge.s32.totalorder %s1238_s8, 2  ;;  %s778_s30 = sand.u32 1, %s1218_s26  }
 0x383   : > { %p1515_p3 = scmp.ne.s32.totalorder %s1508_s14, 0  ;;  %s779_s10 = scalar_lea.sflag [#allocation5], %s778_s30 }
 0x385   : > { %p997_p5 = pnand %p1004_p2, %p1515_p3 }
 0x387   : > { %1213 = dma.done.wait (!%p997_p5), %s779_s10, 128  }
 0x388   : > { %1215 = vsyncadd (!%p997_p5), %s779_s10, 4294967168  ;;  %s23_s8 = sadd.s32 1, %s1238_s8   ;;  %s1516_s29 = sld [smem:[#allocation12_spill]] }
 0x389   : > { %p20_p6 = scmp.ge.s32.totalorder %s23_s8, 4   ;;  %s1517_s30 = sld [smem:[#allocation13_spill]] }
 0x38a   : > { %s1518_s26 = smov %s1222_s27  ;;  %s1519_s27 = smov %s1226_s28 }
 0x38b   : > { %s1520_s28 = smov %s1344_s15  ;;  %22 = sbr.rel (!%p20_p6) target bundleno = 8 (0x8), region = 95 }
 0x392   :  { %784 = vsyncpa [#allocation4], 1 }
 0x393   :  { %786 = vsyncpa [#allocation4 + $0x1], 1 }
 0x394   :  { %787 = vsyncpa [#allocation7], 1 }
 0x395   :  { %788 = vsyncpa [#allocation5], 1 }
 0x396   :  { %790 = vsyncpa [#allocation5 + $0x1], 1 }

</bundles_post_ra>
